<compile_context>
chip_gen: v6e
topology: v6e:2x2x1
jax: 0.10.0
libtpu: 0.0.40
codegen_flags: <defaults>
</compile_context>

<pallas_src>
from functools import partial

import jax
import jax.numpy as jnp
from jax.experimental import pallas as pl
from jax.experimental.pallas import tpu as pltpu


def _cnn_kernel(x_ref, w_ref, b_ref, o_ref):
    # x_ref: (C_in*L, TILE_N)        -- raw input, batch tile on the lane axis
    # w_ref: (L_out*C_out, C_in*L)   -- Toeplitz-expanded conv filter
    # b_ref: (C_out, 1)              -- f32 bias
    # o_ref: (C_out, TILE_N)         -- pooled output, batch on lanes
    c_out = o_ref.shape[0]

    # One MXU call computes the conv at every output position for the whole
    # batch tile; f32 accumulation regardless of the streamed dtype.
    y = jnp.dot(w_ref[...], x_ref[...], preferred_element_type=jnp.float32)
    l_out = y.shape[0] // c_out

    # AdaptiveMaxPool1d(1): running element-wise max over output positions.
    # Rows are laid out t-major / o-minor, so each slice is sublane-aligned
    # for C_out == 8.  Pure VPU work, no cross-lane reductions.
    acc = y[0:c_out]
    for t in range(1, l_out):
        acc = jnp.maximum(acc, y[t * c_out:(t + 1) * c_out])

    # Bias + ReLU after the max: max_t relu(conv_t + b) == relu(max_t conv_t + b).
    o_ref[...] = jnp.maximum(acc + b_ref[...], 0.0).astype(o_ref.dtype)
    # TODO(synk): if a bundle dump ever shows the vmatmul slot binding, drive
    # the MXU explicitly (latch the expanded weight once per tile).


def _vmem_capacity_bytes():
    try:
        return int(pltpu.get_tpu_info().vmem_capacity_bytes)
    except Exception:
        return 64 * 1024 * 1024  # conservative (v7x per-TC VMEM)


def _choose_tile_n(n, bytes_per_example, vmem_bytes):
    # Per-input-buffer budget (Pallas double-buffers each streamed block).
    budget = max(vmem_bytes // 8, 1 << 20)
    cap = (budget // max(int(bytes_per_example), 1)) // 128 * 128
    cap = int(max(128, min(cap, 4096)))  # 2048-4096: amortizes ~0.35us/grid-step
    n_lanes = int(pl.cdiv(n, 128)) * 128
    if n_lanes < 256:
        return 128
    # Prefer >= 2 grid steps when N allows: shards across v7x's two TensorCores
    # and keeps DMA/compute pipelining alive on every generation.
    half = max(128, (n_lanes // 2) // 128 * 128)
    return int(min(cap, half))


@partial(jax.jit, static_argnames=("stream_dtype",))
def cnn_forward(x, w, b, stream_dtype=jnp.bfloat16):
    """x: (N, C_in, L), w: (C_out, C_in, K), b: (C_out,) -> (N, C_out) f32."""
    N, C_in, L = x.shape
    C_out, _, K = w.shape
    L_out = L - K + 1
    CL = C_in * L

    vmem_cap = _vmem_capacity_bytes()
    itemsize = jnp.dtype(stream_dtype).itemsize
    tile_n = _choose_tile_n(N, CL * itemsize, vmem_cap)
    n_pad = int(pl.cdiv(N, tile_n)) * tile_n

    # Stream x once, minimal layout, batch on lanes: x_flat[c*L + l, n] = x[n, c, l].
    # Padding happens on this minimal-size array (no inflated copy exists).
    x_flat = jnp.transpose(x, (1, 2, 0)).reshape(CL, N).astype(stream_dtype)
    if n_pad != N:
        x_flat = jnp.pad(x_flat, ((0, 0), (0, n_pad - N)))

    # Toeplitz-banded expansion of the conv filter (tiny: (L_out*C_out, C_in*L)):
    #   wexp[t*C_out + o, c*L + l] = w[o, c, l - t] if 0 <= l - t < K else 0
    # so  wexp @ x_flat  yields every conv output position in a single matmul.
    tap = jnp.arange(L)[None, :] - jnp.arange(L_out)[:, None]      # (L_out, L)
    valid = (tap >= 0) & (tap < K)
    wexp = w[:, :, jnp.clip(tap, 0, K - 1)]                        # (C_out, C_in, L_out, L)
    wexp = jnp.where(valid[None, None], wexp, 0.0)
    wexp = jnp.transpose(wexp, (2, 0, 1, 3)).reshape(L_out * C_out, CL)
    wexp = wexp.astype(stream_dtype)

    b2 = b.reshape(C_out, 1).astype(jnp.float32)

    # VMEM limit: actual need (double-buffered blocks) + headroom, clamped so
    # it is safe on v7x's smaller VMEM as well.
    x_blk = CL * tile_n * itemsize
    o_blk = C_out * tile_n * 4
    w_bytes = L_out * C_out * CL * itemsize
    vmem_need = 2 * x_blk + 2 * o_blk + 2 * w_bytes + (2 << 20)
    vmem_limit = int(min(max(vmem_need, 16 << 20), max(vmem_cap // 2, 16 << 20)))

    out_t = pl.pallas_call(
        _cnn_kernel,
        out_shape=jax.ShapeDtypeStruct((C_out, n_pad), jnp.float32),
        grid_spec=pltpu.PrefetchScalarGridSpec(
            num_scalar_prefetch=0,
            grid=(n_pad // tile_n,),
            in_specs=[
                pl.BlockSpec((CL, tile_n), lambda i: (0, i)),
                pl.BlockSpec((L_out * C_out, CL), lambda i: (0, 0)),
                pl.BlockSpec((C_out, 1), lambda i: (0, 0)),
            ],
            out_specs=pl.BlockSpec((C_out, tile_n), lambda i: (0, i)),
        ),
        compiler_params=pltpu.CompilerParams(
            dimension_semantics=("parallel",),
            vmem_limit_bytes=vmem_limit,
        ),
    )(x_flat, wexp, b2)

    # Drop batch padding, transpose back to (N, C_out).
    return out_t[:, :N].T


def _reference(x, w, b):
    # Pure-JAX reference of the same forward pass (f32).
    N, C_in, L = x.shape
    C_out, _, K = w.shape
    L_out = L - K + 1
    out = jnp.zeros((N, C_out, L_out), jnp.float32)
    for k in range(K):
        out = out + jnp.einsum("oc,ncl->nol", w[:, :, k], x[:, :, k:k + L_out])
    out = out + b[None, :, None]
    out = jnp.maximum(out, 0.0)
    return jnp.max(out, axis=-1)


if __name__ == "__main__":
    key = jax.random.PRNGKey(0)
    k_x, k_w, k_b = jax.random.split(key, 3)

    batch, in_channels, length = 2, 4, 16
    out_channels, ksize = 8, 5

    x = jax.random.normal(k_x, (batch, in_channels, length), dtype=jnp.float32)
    # Deterministic parameter init (mimics nn.Conv1d parameter shapes).
    w = jax.random.normal(k_w, (out_channels, in_channels, ksize), dtype=jnp.float32) * 0.1
    b = jax.random.normal(k_b, (out_channels,), dtype=jnp.float32) * 0.1

    ref = _reference(x, w, b)

    # f32 streaming path: bit-for-bit comparable to the reference math.
    out_f32 = jax.block_until_ready(cnn_forward(x, w, b, stream_dtype=jnp.float32))
    assert out_f32.shape == (batch, out_channels)
    assert jnp.allclose(out_f32, ref, atol=1e-4, rtol=1e-4), \
        float(jnp.max(jnp.abs(out_f32 - ref)))

    # bf16 streaming path (default: halves HBM bytes on the dominant stream;
    # accumulation / max / bias / ReLU remain f32).
    out_bf16 = jax.block_until_ready(cnn_forward(x, w, b))
    assert out_bf16.shape == (batch, out_channels)
    assert jnp.allclose(out_bf16, ref, atol=5e-2, rtol=5e-2), \
        float(jnp.max(jnp.abs(out_bf16 - ref)))

    print("KERNEL_OK")
</pallas_src>

<mosaic_0001>
module attributes {stable_mosaic.version = 11 : i64} {
  func.func @_cnn_kernel(%arg0: i32, %arg1: memref<64x128xf32, #tpu.memory_space<vmem>>, %arg2: memref<96x64xf32, #tpu.memory_space<vmem>>, %arg3: memref<8x1xf32, #tpu.memory_space<vmem>>, %arg4: memref<8x128xf32, #tpu.memory_space<vmem>>) attributes {dimension_semantics = [#tpu.dimension_semantics<parallel>], iteration_bounds = array<i64: 1>, scalar_prefetch = 0 : i64, scratch_operands = 0 : i64, tpu.core_type = #tpu.core_type<tc>, window_params = [{transform_indices = @transform_0, window_bounds = array<i64: 64, 128>}, {pipeline_mode = #tpu.pipeline_mode<synchronous>, transform_indices = @transform_1, window_bounds = array<i64: 96, 64>}, {pipeline_mode = #tpu.pipeline_mode<synchronous>, transform_indices = @transform_2, window_bounds = array<i64: 8, 1>}, {transform_indices = @transform_3, window_bounds = array<i64: 8, 128>}]} {
    %c0 = arith.constant 0 : index
    %c0_0 = arith.constant 0 : index
    %0 = vector.load %arg2[%c0, %c0_0] : memref<96x64xf32, #tpu.memory_space<vmem>>, vector<96x64xf32>
    %c0_1 = arith.constant 0 : index
    %c0_2 = arith.constant 0 : index
    %1 = vector.load %arg1[%c0_1, %c0_2] : memref<64x128xf32, #tpu.memory_space<vmem>>, vector<64x128xf32>
    %cst = arith.constant dense<0.000000e+00> : vector<96x128xf32>
    %2 = tpu.matmul %0, %1, %cst {dimension_numbers = #tpu.dot_dimension_numbers<[1], [0], [0], [1], [0, 0, 1, 1], [], []>} : vector<96x64xf32>, vector<64x128xf32>, vector<96x128xf32> -> vector<96x128xf32>
    %3 = vector.extract_strided_slice %2 {offsets = [0, 0], sizes = [8, 128], strides = [1, 1]} : vector<96x128xf32> to vector<8x128xf32>
    %4 = vector.extract_strided_slice %2 {offsets = [8, 0], sizes = [8, 128], strides = [1, 1]} : vector<96x128xf32> to vector<8x128xf32>
    %5 = arith.maximumf %3, %4 : vector<8x128xf32>
    %6 = vector.extract_strided_slice %2 {offsets = [16, 0], sizes = [8, 128], strides = [1, 1]} : vector<96x128xf32> to vector<8x128xf32>
    %7 = arith.maximumf %5, %6 : vector<8x128xf32>
    %8 = vector.extract_strided_slice %2 {offsets = [24, 0], sizes = [8, 128], strides = [1, 1]} : vector<96x128xf32> to vector<8x128xf32>
    %9 = arith.maximumf %7, %8 : vector<8x128xf32>
    %10 = vector.extract_strided_slice %2 {offsets = [32, 0], sizes = [8, 128], strides = [1, 1]} : vector<96x128xf32> to vector<8x128xf32>
    %11 = arith.maximumf %9, %10 : vector<8x128xf32>
    %12 = vector.extract_strided_slice %2 {offsets = [40, 0], sizes = [8, 128], strides = [1, 1]} : vector<96x128xf32> to vector<8x128xf32>
    %13 = arith.maximumf %11, %12 : vector<8x128xf32>
    %14 = vector.extract_strided_slice %2 {offsets = [48, 0], sizes = [8, 128], strides = [1, 1]} : vector<96x128xf32> to vector<8x128xf32>
    %15 = arith.maximumf %13, %14 : vector<8x128xf32>
    %16 = vector.extract_strided_slice %2 {offsets = [56, 0], sizes = [8, 128], strides = [1, 1]} : vector<96x128xf32> to vector<8x128xf32>
    %17 = arith.maximumf %15, %16 : vector<8x128xf32>
    %18 = vector.extract_strided_slice %2 {offsets = [64, 0], sizes = [8, 128], strides = [1, 1]} : vector<96x128xf32> to vector<8x128xf32>
    %19 = arith.maximumf %17, %18 : vector<8x128xf32>
    %20 = vector.extract_strided_slice %2 {offsets = [72, 0], sizes = [8, 128], strides = [1, 1]} : vector<96x128xf32> to vector<8x128xf32>
    %21 = arith.maximumf %19, %20 : vector<8x128xf32>
    %22 = vector.extract_strided_slice %2 {offsets = [80, 0], sizes = [8, 128], strides = [1, 1]} : vector<96x128xf32> to vector<8x128xf32>
    %23 = arith.maximumf %21, %22 : vector<8x128xf32>
    %24 = vector.extract_strided_slice %2 {offsets = [88, 0], sizes = [8, 128], strides = [1, 1]} : vector<96x128xf32> to vector<8x128xf32>
    %25 = arith.maximumf %23, %24 : vector<8x128xf32>
    %c0_3 = arith.constant 0 : index
    %c0_4 = arith.constant 0 : index
    %26 = vector.load %arg3[%c0_3, %c0_4] : memref<8x1xf32, #tpu.memory_space<vmem>>, vector<8x1xf32>
    %27 = vector.broadcast %26 : vector<8x1xf32> to vector<8x128xf32>
    %28 = arith.addf %25, %27 : vector<8x128xf32>
    %cst_5 = arith.constant 0.000000e+00 : f32
    %29 = vector.broadcast %cst_5 : f32 to vector<8x128xf32>
    %30 = arith.maximumf %28, %29 : vector<8x128xf32>
    %c0_6 = arith.constant 0 : index
    %c0_7 = arith.constant 0 : index
    %31 = vector.load %arg4[%c0_6, %c0_7] : memref<8x128xf32, #tpu.memory_space<vmem>>, vector<8x128xf32>
    tpu.vector_store %arg4[%c0_6, %c0_7], %30 {strides = array<i32>} : memref<8x128xf32, #tpu.memory_space<vmem>>, vector<8x128xf32>,
    return
  }
  func.func @transform_0(%arg0: i32) -> (i32, i32) {
    %c0_i32 = arith.constant 0 : i32
    %c0_i32_0 = arith.constant 0 : i32
    return %c0_i32, %arg0 : i32, i32
  }
  func.func @transform_1(%arg0: i32) -> (i32, i32) {
    %c0_i32 = arith.constant 0 : i32
    %c0_i32_0 = arith.constant 0 : i32
    %c0_i32_1 = arith.constant 0 : i32
    return %c0_i32, %c0_i32_0 : i32, i32
  }
  func.func @transform_2(%arg0: i32) -> (i32, i32) {
    %c0_i32 = arith.constant 0 : i32
    %c0_i32_0 = arith.constant 0 : i32
    %c0_i32_1 = arith.constant 0 : i32
    return %c0_i32, %c0_i32_0 : i32, i32
  }
  func.func @transform_3(%arg0: i32) -> (i32, i32) {
    %c0_i32 = arith.constant 0 : i32
    %c0_i32_0 = arith.constant 0 : i32
    return %c0_i32, %arg0 : i32, i32
  }
}

</mosaic_0001>

<bundles_post_ra>
// kernel: cnn_forward.1
= control target key start
LH: loop header
LB: loop body
LE: loop exit
PB: predicated region body
PF: predicated region fallthrough
CT: control target
= control target key end

     0   :  { %v304_v2 = vmov 0   ;;  %vm34_vm0 = vcmask 523264   ;;  %s403_s0 = inlined_call_operand.vmem [shape: f32[64,128], index: 0, kind: input, shape index: {}]   ;;  %s404_s1 = inlined_call_operand.vmem [shape: f32[96,64], index: 1, kind: input, shape index: {}]   ;;  %s405_s2 = inlined_call_operand.vmem [shape: f32[8,1], index: 2, kind: input, shape index: {}]   ;;  %s406_s3 = inlined_call_operand.vmem [shape: f32[8,128], index: 3, kind: output, shape index: {}]  }
   0x1   :  { %v33_v0 = vld [vmem:[%s403_s0 + $0x38] sm:$0xff]  ;;  %v32_v1 = vld [vmem:[%s403_s0 + $0x30] sm:$0xff]  ;;  %303 = vset.pattern.permute.xlu0 %v304_v2  ;;  %v31_v3 = vld [vmem:[%s403_s0 + $0x28] sm:$0xff] }
   0x2   :  { %252 = vmatprep.subr.mxu0 %v33_v0  ;;  %286 = vmatprep.subr.mxu1 %v33_v0  ;;  %v30_v4 = vld [vmem:[%s403_s0 + $0x20] sm:$0xff]  ;;  %v29_v6 = vld [vmem:[%s403_s0 + $0x18] sm:$0xff]  ;;  %v28_v7 = vld [vmem:[%s403_s0 + $0x10] sm:$0xff] }
   0x3   :  { %253 = vmatpush3.msra.mxu0 %v33_v0  ;;  %294 = vmatpush3.msra.mxu1 %v33_v0  ;;  %v14_v5 = vld [vmem:[%s404_s1] sm:$0xff]  ;;  %v27_v8 = vld [vmem:[%s403_s0 + $0x8] sm:$0xff]  ;;  %v16_v11 = vld [vmem:[%s404_s1 + $0x10] sm:$0xff] }
   0x4   :  { %254 = vmatprep.subr.mxu0 %v32_v1  ;;  %287 = vmatprep.subr.mxu1 %v32_v1  ;;  %v26_v9 = vld [vmem:[%s403_s0] sm:$0xff]  ;;  %v15_v10 = vld [vmem:[%s404_s1 + $0x8] sm:$0xff]  ;;  %v20_v12 = vld [vmem:[%s404_s1 + $0x30] sm:$0xff] }
   0x5   :  { %255 = vmatpush3.msra.mxu0 %v32_v1  ;;  %295 = vmatpush3.msra.mxu1 %v32_v1  ;;  %v21_v13 = vld [vmem:[%s404_s1 + $0x38] sm:$0xff]  ;;  %v207_v14 = vld [vmem:[%s405_s2] sm:$0xff]  ;;  %v23_v18 = vld [vmem:[%s404_s1 + $0x48] sm:$0xff] }
   0x6   :  { %256 = vmatprep.subr.mxu0 %v31_v3  ;;  %288 = vmatprep.subr.mxu1 %v31_v3  ;;  %v22_v15 = vld [vmem:[%s404_s1 + $0x40] sm:$0xff]  ;;  %v17_v16 = vld [vmem:[%s404_s1 + $0x18] sm:$0xff]  ;;  %v24_v19 = vld [vmem:[%s404_s1 + $0x50] sm:$0xff] }
   0x7   :  { %257 = vmatpush3.msra.mxu0 %v31_v3  ;;  %296 = vmatpush3.msra.mxu1 %v31_v3  ;;  %v18_v17 = vld [vmem:[%s404_s1 + $0x20] sm:$0xff]  ;;  %v19_v20 = vld [vmem:[%s404_s1 + $0x28] sm:$0xff]  ;;  %v25_v21 = vld [vmem:[%s404_s1 + $0x58] sm:$0xff] }
   0x8   :  { %258 = vmatprep.subr.mxu0 %v30_v4  ;;  %268 = vmatprep.mubr.msk.f32.mxu0 %vm34_vm0, %v14_v5 }
   0x9   :  { %259 = vmatpush3.msra.mxu0 %v30_v4  ;;  %289 = vmatprep.subr.mxu1 %v30_v4 }
   0xa   :  { %260 = vmatprep.subr.mxu0 %v29_v6  ;;  %297 = vmatpush3.msra.mxu1 %v30_v4 }
   0xb   :  { %261 = vmatpush3.msra.mxu0 %v29_v6  ;;  %290 = vmatprep.subr.mxu1 %v29_v6 }
   0xc   :  { %262 = vmatprep.subr.mxu0 %v28_v7  ;;  %298 = vmatpush3.msra.mxu1 %v29_v6 }
   0xd   :  { %263 = vmatpush3.msra.mxu0 %v28_v7  ;;  %291 = vmatprep.subr.mxu1 %v28_v7 }
   0xe   :  { %264 = vmatprep.subr.mxu0 %v27_v8  ;;  %299 = vmatpush3.msra.mxu1 %v28_v7 }
   0xf   :  { %265 = vmatpush3.msra.mxu0 %v27_v8  ;;  %292 = vmatprep.subr.mxu1 %v27_v8 }
  0x10   :  { %266 = vmatprep.subr.mxu0 %v26_v9  ;;  %300 = vmatpush3.msra.mxu1 %v27_v8 }
  0x11   :  { %267 = vmatpush3.msra.mxu0 %v26_v9  ;;  %293 = vmatprep.subr.mxu1 %v26_v9 }
  0x12   :  { %269 = vmatmul.mubr.msk.f32.vlgmr.msra.gmra.mxu0 %vm34_vm0, %v15_v10  ;;  %301 = vmatpush3.msra.mxu1 %v26_v9 }
  0x13   :  { %271 = vmatprep.mubr.msk.f32.mxu0 %vm34_vm0, %v16_v11  ;;  %277 = vmatprep.mubr.msk.f32.mxu1 %vm34_vm0, %v20_v12 }
  0x14   :  { %278 = vmatmul.mubr.msk.f32.vlgmr.msra.gmra.mxu1 %vm34_vm0, %v21_v13  ;;  %210 = vperm.xlu0 %303, %v207_v14  }
  0x15   :  { %280 = vmatprep.mubr.msk.f32.mxu1 %vm34_vm0, %v22_v15 }
  0x16   :  { %272 = vmatmul.mubr.msk.f32.gmra.mxu0 %vm34_vm0, %v17_v16 }
  0x17   :  { %274 = vmatprep.mubr.msk.f32.mxu0 %vm34_vm0, %v18_v17 }
  0x18   :  { %281 = vmatmul.mubr.msk.f32.gmra.mxu1 %vm34_vm0, %v23_v18 }
  0x19   :  { %283 = vmatprep.mubr.msk.f32.mxu1 %vm34_vm0, %v24_v19 }
  0x1a   :  { %275 = vmatmul.mubr.msk.f32.gmra.mxu0 %vm34_vm0, %v19_v20 }
  0x1c   :  { %284 = vmatmul.mubr.msk.f32.gmra.mxu1 %vm34_vm0, %v25_v21 }
  0x8f   :  { %v211_v44 = vpop.permute.xlu0 %210 }
  0xd2   :  { %v270_v22 = vpop.f32.mrf.mxu0 }
  0xd4   :  { %v137_v23 = vpop.f32.mrf.mxu0  ;;  %v279_v24 = vpop.f32.mrf.mxu1 }
  0xd5   :  { %v196_v26 = vmax.f32 %v137_v23, %v270_v22 }
  0xd6   :  { %v273_v25 = vpop.f32.mrf.mxu0  ;;  %v167_v28 = vpop.f32.mrf.mxu1 }
  0xd8   :  { %v147_v27 = vpop.f32.mrf.mxu0  ;;  %v282_v33 = vpop.f32.mrf.mxu1 }
  0xd9   :  { %v197_v29 = vmax.f32 %v196_v26, %v147_v27 }
  0xda   :  { %v276_v30 = vpop.f32.mrf.mxu0  ;;  %v177_v36 = vpop.f32.mrf.mxu1 }
  0xdb   :  { %v198_v31 = vmax.f32 %v197_v29, %v273_v25 }
  0xdc   :  { %v157_v32 = vpop.f32.mrf.mxu0  ;;  %v285_v39 = vpop.f32.mrf.mxu1 }
  0xdd   :  { %v199_v34 = vmax.f32 %v198_v31, %v157_v32 }
  0xde   :  { %v187_v42 = vpop.f32.mrf.mxu1 }
  0xdf   :  { %v200_v35 = vmax.f32 %v199_v34, %v276_v30 }
  0xe1   :  { %v201_v37 = vmax.f32 %v200_v35, %v167_v28 }
  0xe3   :  { %v202_v38 = vmax.f32 %v201_v37, %v279_v24 }
  0xe5   :  { %v203_v40 = vmax.f32 %v202_v38, %v177_v36 }
  0xe7   :  { %v204_v41 = vmax.f32 %v203_v40, %v282_v33 }
  0xe9   :  { %v205_v43 = vmax.f32 %v204_v41, %v187_v42 }
  0xeb   :  { %v206_v45 = vmax.f32 %v205_v43, %v285_v39 }
  0xed   :  { %v213_v46 = vadd.f32 %v211_v44, %v206_v45 }
  0xef   :  { %v214_v47 = vmax.f32 %v213_v46, 0.0 }
  0xf1   :  { %215 = vst [vmem:[%s406_s3] sm:$0xff] %v214_v47 }

</bundles_post_ra>
